<compile_context>
chip_gen: v7x
topology: tpu7x:2x2x1
jax: 0.10.0
libtpu: 0.0.40
codegen_flags: <defaults>
</compile_context>

<pallas_src>
import jax
import jax.numpy as jnp
from jax import lax
from jax.experimental import pallas as pl
from jax.experimental.pallas import tpu as pltpu


def strength_conv2d(x, weight, t, bias=None, *, stride=1, padding=0,
                    dilation=1, groups=1):
    """x: (N, C, H, W); weight: (OC, C//groups, K, K) (frozen all-ones);
    t: (OC,); bias: (OC,)|None.  Returns (N, OC, OH, OW) in NCHW.

    NOTE: the fast path relies on the module's frozen all-ones weight
    (rank-1 effective filter).  Arbitrary weight values are NOT supported.
    """
    N, C, H, W = x.shape
    OC, Cg, KH, KW = weight.shape
    G = groups
    assert C % G == 0 and OC % G == 0 and Cg == C // G

    x = x.astype(jnp.float32)
    t = t.astype(jnp.float32)
    b = (jnp.zeros((OC,), jnp.float32) if bias is None
         else bias.astype(jnp.float32))

    Hp, Wp = H + 2 * padding, W + 2 * padding
    # stride-1 ("full") output extents; stride applied by subsampling below.
    OHf = Hp - dilation * (KH - 1)
    OWf = Wp - dilation * (KW - 1)
    assert OHf > 0 and OWf > 0, "kernel does not fit in padded input"
    Cg_ = C // G
    OCg = OC // G

    def kernel(x_ref, t_ref, b_ref, out_ref, xs_ref):
        # x_ref  : (1, C, H, W)       VMEM
        # t_ref  : (OC,)              SMEM (per-channel strength)
        # b_ref  : (OC,)              SMEM (bias)
        # out_ref: (1, OC, OHf, OWf)  VMEM (NCHW block, written directly)
        # xs_ref : (G, Hp, Wp)        VMEM scratch: zero-padded channel sums
        if padding > 0:
            xs_ref[...] = jnp.zeros_like(xs_ref)
        for g in range(G):
            csum = jnp.sum(x_ref[0, g * Cg_:(g + 1) * Cg_], axis=0)
            xs_ref[g, padding:padding + H, padding:padding + W] = csum

        # KxK box sum per group: KH*KW shifted adds (VPU only, static offsets).
        accs = []
        for g in range(G):
            acc = jnp.zeros((OHf, OWf), jnp.float32)
            for kh in range(KH):
                for kw in range(KW):
                    acc = acc + xs_ref[g,
                                       kh * dilation:kh * dilation + OHf,
                                       kw * dilation:kw * dilation + OWf]
            accs.append(acc)

        # Outer product with the per-channel strength + bias, stored as NCHW.
        for oc in range(OC):
            out_ref[0, oc] = accs[oc // OCg] * t_ref[oc] + b_ref[oc]

    # Per-grid-step VMEM footprint (double-buffered in/out blocks + scratch).
    per_step = 4 * (2 * C * H * W + 2 * OC * OHf * OWf + G * Hp * Wp)
    vmem_limit = int(min(max(per_step + (8 << 20), 32 << 20), 56 << 20))

    cost = pl.CostEstimate(
        flops=N * (C * H * W + G * KH * KW * OHf * OWf + 2 * OC * OHf * OWf),
        transcendentals=0,
        bytes_accessed=4 * (N * C * H * W + N * OC * OHf * OWf + 2 * OC),
    )

    out_full = pl.pallas_call(
        kernel,
        out_shape=jax.ShapeDtypeStruct((N, OC, OHf, OWf), jnp.float32),
        grid_spec=pltpu.PrefetchScalarGridSpec(
            num_scalar_prefetch=0,
            grid=(N,),
            in_specs=[
                pl.BlockSpec((1, C, H, W), lambda n: (n, 0, 0, 0)),
                pl.BlockSpec(memory_space=pltpu.MemorySpace.SMEM),
                pl.BlockSpec(memory_space=pltpu.MemorySpace.SMEM),
            ],
            out_specs=pl.BlockSpec((1, OC, OHf, OWf), lambda n: (n, 0, 0, 0)),
            scratch_shapes=[pltpu.VMEM((G, Hp, Wp), jnp.float32)],
        ),
        compiler_params=pltpu.CompilerParams(
            dimension_semantics=("parallel",),
            vmem_limit_bytes=vmem_limit,
        ),
        cost_estimate=cost,
    )(x, t, b)

    if stride > 1:
        # TODO(synk): stride handled by subsampling the stride-1 box-sum
        # (~stride^2 extra work on the small output); fold strided pl.ds
        # slices into the kernel if large strides ever matter.
        out_full = out_full[:, :, ::stride, ::stride]
    return out_full


def _reference(x, weight, t, bias, stride, padding, dilation, groups):
    w_eff = weight * t[:, None, None, None]
    out = lax.conv_general_dilated(
        x, w_eff, (stride, stride),
        ((padding, padding), (padding, padding)),
        rhs_dilation=(dilation, dilation),
        dimension_numbers=("NCHW", "OIHW", "NCHW"),
        feature_group_count=groups,
        precision=lax.Precision.HIGHEST,
    )
    return out + bias[None, :, None, None]


if __name__ == "__main__":
    in_channels, out_channels, kernel_size = 4, 8, 3

    key = jax.random.PRNGKey(0)
    k_t, k_x1, k_x2, k_x3 = jax.random.split(key, 4)

    # Deterministic parameter init mirroring __init__:
    t = jax.random.normal(k_t, (out_channels,), jnp.float32)      # randn(OC)
    bias = jnp.ones((out_channels,), jnp.float32)                 # ones(OC)

    # Case 1: (2, 4, 16, 16), stride=1, padding=1, groups=1.
    weight1 = jnp.ones((out_channels, in_channels, kernel_size, kernel_size),
                       jnp.float32)                               # frozen ones
    x1 = jax.random.normal(k_x1, (2, in_channels, 16, 16), jnp.float32)
    out1 = strength_conv2d(x1, weight1, t, bias,
                           stride=1, padding=1, dilation=1, groups=1)
    out1 = jax.block_until_ready(out1)
    ref1 = _reference(x1, weight1, t, bias, 1, 1, 1, 1)
    assert out1.shape == ref1.shape
    assert jnp.allclose(out1, ref1, atol=1e-4, rtol=1e-4)

    # Case 2: odd spatial shape, no padding.
    x2 = jax.random.normal(k_x2, (1, in_channels, 15, 13), jnp.float32)
    out2 = strength_conv2d(x2, weight1, t, bias,
                           stride=1, padding=0, dilation=1, groups=1)
    out2 = jax.block_until_ready(out2)
    ref2 = _reference(x2, weight1, t, bias, 1, 0, 1, 1)
    assert out2.shape == ref2.shape
    assert jnp.allclose(out2, ref2, atol=1e-4, rtol=1e-4)

    # Case 3: stride=2, padding=2, dilation=2, groups=2.
    weight3 = jnp.ones((out_channels, in_channels // 2, kernel_size,
                        kernel_size), jnp.float32)
    x3 = jax.random.normal(k_x3, (2, in_channels, 16, 16), jnp.float32)
    out3 = strength_conv2d(x3, weight3, t, bias,
                           stride=2, padding=2, dilation=2, groups=2)
    out3 = jax.block_until_ready(out3)
    ref3 = _reference(x3, weight3, t, bias, 2, 2, 2, 2)
    assert out3.shape == ref3.shape
    assert jnp.allclose(out3, ref3, atol=1e-4, rtol=1e-4)

    print("KERNEL_OK")
</pallas_src>

<mosaic_0001>
module attributes {stable_mosaic.version = 11 : i64} {
  func.func @kernel(%arg0: i32, %arg1: memref<1x4x16x16xf32, #tpu.memory_space<vmem>>, %arg2: memref<8xf32, #tpu.memory_space<smem>>, %arg3: memref<8xf32, #tpu.memory_space<smem>>, %arg4: memref<1x8x16x16xf32, #tpu.memory_space<vmem>>, %arg5: memref<1x18x18xf32, #tpu.memory_space<vmem>>) attributes {dimension_semantics = [#tpu.dimension_semantics<parallel>], iteration_bounds = array<i64: 2>, scalar_prefetch = 0 : i64, scratch_operands = 1 : i64, tpu.core_type = #tpu.core_type<tc>, window_params = [{transform_indices = @transform_0, window_bounds = array<i64: 1, 4, 16, 16>}, {transform_indices = @transform_1, window_bounds = array<i64: 8>}, {transform_indices = @transform_2, window_bounds = array<i64: 8>}, {transform_indices = @transform_3, window_bounds = array<i64: 1, 8, 16, 16>}]} {
    %cst = arith.constant 0.000000e+00 : f32
    %0 = vector.broadcast %cst : f32 to vector<1x18x18xf32>
    %c0 = arith.constant 0 : index
    %c0_0 = arith.constant 0 : index
    %c0_1 = arith.constant 0 : index
    %1 = vector.load %arg5[%c0, %c0_0, %c0_1] : memref<1x18x18xf32, #tpu.memory_space<vmem>>, vector<1x18x18xf32>
    tpu.vector_store %arg5[%c0, %c0_0, %c0_1], %0 {strides = array<i32>} : memref<1x18x18xf32, #tpu.memory_space<vmem>>, vector<1x18x18xf32>,
    %c0_2 = arith.constant 0 : index
    %c0_3 = arith.constant 0 : index
    %c0_4 = arith.constant 0 : index
    %c0_5 = arith.constant 0 : index
    %2 = vector.load %arg1[%c0_2, %c0_3, %c0_4, %c0_5] : memref<1x4x16x16xf32, #tpu.memory_space<vmem>>, vector<1x4x16x16xf32>
    %3 = vector.shape_cast %2 : vector<1x4x16x16xf32> to vector<4x16x16xf32>
    %cst_6 = arith.constant dense<0.000000e+00> : vector<16x16xf32>
    %4 = vector.multi_reduction <add>, %3, %cst_6 [0] : vector<4x16x16xf32> to vector<16x16xf32>
    %c0_7 = arith.constant 0 : index
    %c1 = arith.constant 1 : index
    %c1_8 = arith.constant 1 : index
    %5 = vector.load %arg5[%c0_7, %c1, %c1_8] : memref<1x18x18xf32, #tpu.memory_space<vmem>>, vector<1x16x16xf32>
    %6 = vector.shape_cast %5 : vector<1x16x16xf32> to vector<16x16xf32>
    %7 = vector.shape_cast %4 : vector<16x16xf32> to vector<1x16x16xf32>
    tpu.vector_store %arg5[%c0_7, %c1, %c1_8], %7 {strides = array<i32>} : memref<1x18x18xf32, #tpu.memory_space<vmem>>, vector<1x16x16xf32>,
    %cst_9 = arith.constant 0.000000e+00 : f32
    %8 = vector.broadcast %cst_9 : f32 to vector<16x16xf32>
    %c0_10 = arith.constant 0 : index
    %c0_11 = arith.constant 0 : index
    %c0_12 = arith.constant 0 : index
    %9 = vector.load %arg5[%c0_10, %c0_11, %c0_12] : memref<1x18x18xf32, #tpu.memory_space<vmem>>, vector<1x16x16xf32>
    %10 = vector.shape_cast %9 : vector<1x16x16xf32> to vector<16x16xf32>
    %11 = arith.addf %8, %10 : vector<16x16xf32>
    %c0_13 = arith.constant 0 : index
    %c0_14 = arith.constant 0 : index
    %c1_15 = arith.constant 1 : index
    %12 = vector.load %arg5[%c0_13, %c0_14, %c1_15] : memref<1x18x18xf32, #tpu.memory_space<vmem>>, vector<1x16x16xf32>
    %13 = vector.shape_cast %12 : vector<1x16x16xf32> to vector<16x16xf32>
    %14 = arith.addf %11, %13 : vector<16x16xf32>
    %c0_16 = arith.constant 0 : index
    %c0_17 = arith.constant 0 : index
    %c2 = arith.constant 2 : index
    %15 = vector.load %arg5[%c0_16, %c0_17, %c2] : memref<1x18x18xf32, #tpu.memory_space<vmem>>, vector<1x16x16xf32>
    %16 = vector.shape_cast %15 : vector<1x16x16xf32> to vector<16x16xf32>
    %17 = arith.addf %14, %16 : vector<16x16xf32>
    %c0_18 = arith.constant 0 : index
    %c1_19 = arith.constant 1 : index
    %c0_20 = arith.constant 0 : index
    %18 = vector.load %arg5[%c0_18, %c1_19, %c0_20] : memref<1x18x18xf32, #tpu.memory_space<vmem>>, vector<1x16x16xf32>
    %19 = vector.shape_cast %18 : vector<1x16x16xf32> to vector<16x16xf32>
    %20 = arith.addf %17, %19 : vector<16x16xf32>
    %c0_21 = arith.constant 0 : index
    %c1_22 = arith.constant 1 : index
    %c1_23 = arith.constant 1 : index
    %21 = vector.load %arg5[%c0_21, %c1_22, %c1_23] : memref<1x18x18xf32, #tpu.memory_space<vmem>>, vector<1x16x16xf32>
    %22 = vector.shape_cast %21 : vector<1x16x16xf32> to vector<16x16xf32>
    %23 = arith.addf %20, %22 : vector<16x16xf32>
    %c0_24 = arith.constant 0 : index
    %c1_25 = arith.constant 1 : index
    %c2_26 = arith.constant 2 : index
    %24 = vector.load %arg5[%c0_24, %c1_25, %c2_26] : memref<1x18x18xf32, #tpu.memory_space<vmem>>, vector<1x16x16xf32>
    %25 = vector.shape_cast %24 : vector<1x16x16xf32> to vector<16x16xf32>
    %26 = arith.addf %23, %25 : vector<16x16xf32>
    %c0_27 = arith.constant 0 : index
    %c2_28 = arith.constant 2 : index
    %c0_29 = arith.constant 0 : index
    %27 = vector.load %arg5[%c0_27, %c2_28, %c0_29] : memref<1x18x18xf32, #tpu.memory_space<vmem>>, vector<1x16x16xf32>
    %28 = vector.shape_cast %27 : vector<1x16x16xf32> to vector<16x16xf32>
    %29 = arith.addf %26, %28 : vector<16x16xf32>
    %c0_30 = arith.constant 0 : index
    %c2_31 = arith.constant 2 : index
    %c1_32 = arith.constant 1 : index
    %30 = vector.load %arg5[%c0_30, %c2_31, %c1_32] : memref<1x18x18xf32, #tpu.memory_space<vmem>>, vector<1x16x16xf32>
    %31 = vector.shape_cast %30 : vector<1x16x16xf32> to vector<16x16xf32>
    %32 = arith.addf %29, %31 : vector<16x16xf32>
    %c0_33 = arith.constant 0 : index
    %c2_34 = arith.constant 2 : index
    %c2_35 = arith.constant 2 : index
    %33 = vector.load %arg5[%c0_33, %c2_34, %c2_35] : memref<1x18x18xf32, #tpu.memory_space<vmem>>, vector<1x16x16xf32>
    %34 = vector.shape_cast %33 : vector<1x16x16xf32> to vector<16x16xf32>
    %35 = arith.addf %32, %34 : vector<16x16xf32>
    %c0_36 = arith.constant 0 : index
    %36 = memref.load %arg2[%c0_36] : memref<8xf32, #tpu.memory_space<smem>>
    %37 = vector.broadcast %36 : f32 to vector<16x16xf32>
    %38 = arith.mulf %35, %37 : vector<16x16xf32>
    %c0_37 = arith.constant 0 : index
    %39 = memref.load %arg3[%c0_37] : memref<8xf32, #tpu.memory_space<smem>>
    %40 = vector.broadcast %39 : f32 to vector<16x16xf32>
    %41 = arith.addf %38, %40 : vector<16x16xf32>
    %c0_38 = arith.constant 0 : index
    %c0_39 = arith.constant 0 : index
    %c0_40 = arith.constant 0 : index
    %c0_41 = arith.constant 0 : index
    %42 = vector.load %arg4[%c0_38, %c0_39, %c0_40, %c0_41] : memref<1x8x16x16xf32, #tpu.memory_space<vmem>>, vector<1x1x16x16xf32>
    %43 = vector.shape_cast %42 : vector<1x1x16x16xf32> to vector<16x16xf32>
    %44 = vector.shape_cast %41 : vector<16x16xf32> to vector<1x1x16x16xf32>
    tpu.vector_store %arg4[%c0_38, %c0_39, %c0_40, %c0_41], %44 {strides = array<i32>} : memref<1x8x16x16xf32, #tpu.memory_space<vmem>>, vector<1x1x16x16xf32>,
    %c1_42 = arith.constant 1 : index
    %45 = memref.load %arg2[%c1_42] : memref<8xf32, #tpu.memory_space<smem>>
    %46 = vector.broadcast %45 : f32 to vector<16x16xf32>
    %47 = arith.mulf %35, %46 : vector<16x16xf32>
    %c1_43 = arith.constant 1 : index
    %48 = memref.load %arg3[%c1_43] : memref<8xf32, #tpu.memory_space<smem>>
    %49 = vector.broadcast %48 : f32 to vector<16x16xf32>
    %50 = arith.addf %47, %49 : vector<16x16xf32>
    %c0_44 = arith.constant 0 : index
    %c1_45 = arith.constant 1 : index
    %c0_46 = arith.constant 0 : index
    %c0_47 = arith.constant 0 : index
    %51 = vector.load %arg4[%c0_44, %c1_45, %c0_46, %c0_47] : memref<1x8x16x16xf32, #tpu.memory_space<vmem>>, vector<1x1x16x16xf32>
    %52 = vector.shape_cast %51 : vector<1x1x16x16xf32> to vector<16x16xf32>
    %53 = vector.shape_cast %50 : vector<16x16xf32> to vector<1x1x16x16xf32>
    tpu.vector_store %arg4[%c0_44, %c1_45, %c0_46, %c0_47], %53 {strides = array<i32>} : memref<1x8x16x16xf32, #tpu.memory_space<vmem>>, vector<1x1x16x16xf32>,
    %c2_48 = arith.constant 2 : index
    %54 = memref.load %arg2[%c2_48] : memref<8xf32, #tpu.memory_space<smem>>
    %55 = vector.broadcast %54 : f32 to vector<16x16xf32>
    %56 = arith.mulf %35, %55 : vector<16x16xf32>
    %c2_49 = arith.constant 2 : index
    %57 = memref.load %arg3[%c2_49] : memref<8xf32, #tpu.memory_space<smem>>
    %58 = vector.broadcast %57 : f32 to vector<16x16xf32>
    %59 = arith.addf %56, %58 : vector<16x16xf32>
    %c0_50 = arith.constant 0 : index
    %c2_51 = arith.constant 2 : index
    %c0_52 = arith.constant 0 : index
    %c0_53 = arith.constant 0 : index
    %60 = vector.load %arg4[%c0_50, %c2_51, %c0_52, %c0_53] : memref<1x8x16x16xf32, #tpu.memory_space<vmem>>, vector<1x1x16x16xf32>
    %61 = vector.shape_cast %60 : vector<1x1x16x16xf32> to vector<16x16xf32>
    %62 = vector.shape_cast %59 : vector<16x16xf32> to vector<1x1x16x16xf32>
    tpu.vector_store %arg4[%c0_50, %c2_51, %c0_52, %c0_53], %62 {strides = array<i32>} : memref<1x8x16x16xf32, #tpu.memory_space<vmem>>, vector<1x1x16x16xf32>,
    %c3 = arith.constant 3 : index
    %63 = memref.load %arg2[%c3] : memref<8xf32, #tpu.memory_space<smem>>
    %64 = vector.broadcast %63 : f32 to vector<16x16xf32>
    %65 = arith.mulf %35, %64 : vector<16x16xf32>
    %c3_54 = arith.constant 3 : index
    %66 = memref.load %arg3[%c3_54] : memref<8xf32, #tpu.memory_space<smem>>
    %67 = vector.broadcast %66 : f32 to vector<16x16xf32>
    %68 = arith.addf %65, %67 : vector<16x16xf32>
    %c0_55 = arith.constant 0 : index
    %c3_56 = arith.constant 3 : index
    %c0_57 = arith.constant 0 : index
    %c0_58 = arith.constant 0 : index
    %69 = vector.load %arg4[%c0_55, %c3_56, %c0_57, %c0_58] : memref<1x8x16x16xf32, #tpu.memory_space<vmem>>, vector<1x1x16x16xf32>
    %70 = vector.shape_cast %69 : vector<1x1x16x16xf32> to vector<16x16xf32>
    %71 = vector.shape_cast %68 : vector<16x16xf32> to vector<1x1x16x16xf32>
    tpu.vector_store %arg4[%c0_55, %c3_56, %c0_57, %c0_58], %71 {strides = array<i32>} : memref<1x8x16x16xf32, #tpu.memory_space<vmem>>, vector<1x1x16x16xf32>,
    %c4 = arith.constant 4 : index
    %72 = memref.load %arg2[%c4] : memref<8xf32, #tpu.memory_space<smem>>
    %73 = vector.broadcast %72 : f32 to vector<16x16xf32>
    %74 = arith.mulf %35, %73 : vector<16x16xf32>
    %c4_59 = arith.constant 4 : index
    %75 = memref.load %arg3[%c4_59] : memref<8xf32, #tpu.memory_space<smem>>
    %76 = vector.broadcast %75 : f32 to vector<16x16xf32>
    %77 = arith.addf %74, %76 : vector<16x16xf32>
    %c0_60 = arith.constant 0 : index
    %c4_61 = arith.constant 4 : index
    %c0_62 = arith.constant 0 : index
    %c0_63 = arith.constant 0 : index
    %78 = vector.load %arg4[%c0_60, %c4_61, %c0_62, %c0_63] : memref<1x8x16x16xf32, #tpu.memory_space<vmem>>, vector<1x1x16x16xf32>
    %79 = vector.shape_cast %78 : vector<1x1x16x16xf32> to vector<16x16xf32>
    %80 = vector.shape_cast %77 : vector<16x16xf32> to vector<1x1x16x16xf32>
    tpu.vector_store %arg4[%c0_60, %c4_61, %c0_62, %c0_63], %80 {strides = array<i32>} : memref<1x8x16x16xf32, #tpu.memory_space<vmem>>, vector<1x1x16x16xf32>,
    %c5 = arith.constant 5 : index
    %81 = memref.load %arg2[%c5] : memref<8xf32, #tpu.memory_space<smem>>
    %82 = vector.broadcast %81 : f32 to vector<16x16xf32>
    %83 = arith.mulf %35, %82 : vector<16x16xf32>
    %c5_64 = arith.constant 5 : index
    %84 = memref.load %arg3[%c5_64] : memref<8xf32, #tpu.memory_space<smem>>
    %85 = vector.broadcast %84 : f32 to vector<16x16xf32>
    %86 = arith.addf %83, %85 : vector<16x16xf32>
    %c0_65 = arith.constant 0 : index
    %c5_66 = arith.constant 5 : index
    %c0_67 = arith.constant 0 : index
    %c0_68 = arith.constant 0 : index
    %87 = vector.load %arg4[%c0_65, %c5_66, %c0_67, %c0_68] : memref<1x8x16x16xf32, #tpu.memory_space<vmem>>, vector<1x1x16x16xf32>
    %88 = vector.shape_cast %87 : vector<1x1x16x16xf32> to vector<16x16xf32>
    %89 = vector.shape_cast %86 : vector<16x16xf32> to vector<1x1x16x16xf32>
    tpu.vector_store %arg4[%c0_65, %c5_66, %c0_67, %c0_68], %89 {strides = array<i32>} : memref<1x8x16x16xf32, #tpu.memory_space<vmem>>, vector<1x1x16x16xf32>,
    %c6 = arith.constant 6 : index
    %90 = memref.load %arg2[%c6] : memref<8xf32, #tpu.memory_space<smem>>
    %91 = vector.broadcast %90 : f32 to vector<16x16xf32>
    %92 = arith.mulf %35, %91 : vector<16x16xf32>
    %c6_69 = arith.constant 6 : index
    %93 = memref.load %arg3[%c6_69] : memref<8xf32, #tpu.memory_space<smem>>
    %94 = vector.broadcast %93 : f32 to vector<16x16xf32>
    %95 = arith.addf %92, %94 : vector<16x16xf32>
    %c0_70 = arith.constant 0 : index
    %c6_71 = arith.constant 6 : index
    %c0_72 = arith.constant 0 : index
    %c0_73 = arith.constant 0 : index
    %96 = vector.load %arg4[%c0_70, %c6_71, %c0_72, %c0_73] : memref<1x8x16x16xf32, #tpu.memory_space<vmem>>, vector<1x1x16x16xf32>
    %97 = vector.shape_cast %96 : vector<1x1x16x16xf32> to vector<16x16xf32>
    %98 = vector.shape_cast %95 : vector<16x16xf32> to vector<1x1x16x16xf32>
    tpu.vector_store %arg4[%c0_70, %c6_71, %c0_72, %c0_73], %98 {strides = array<i32>} : memref<1x8x16x16xf32, #tpu.memory_space<vmem>>, vector<1x1x16x16xf32>,
    %c7 = arith.constant 7 : index
    %99 = memref.load %arg2[%c7] : memref<8xf32, #tpu.memory_space<smem>>
    %100 = vector.broadcast %99 : f32 to vector<16x16xf32>
    %101 = arith.mulf %35, %100 : vector<16x16xf32>
    %c7_74 = arith.constant 7 : index
    %102 = memref.load %arg3[%c7_74] : memref<8xf32, #tpu.memory_space<smem>>
    %103 = vector.broadcast %102 : f32 to vector<16x16xf32>
    %104 = arith.addf %101, %103 : vector<16x16xf32>
    %c0_75 = arith.constant 0 : index
    %c7_76 = arith.constant 7 : index
    %c0_77 = arith.constant 0 : index
    %c0_78 = arith.constant 0 : index
    %105 = vector.load %arg4[%c0_75, %c7_76, %c0_77, %c0_78] : memref<1x8x16x16xf32, #tpu.memory_space<vmem>>, vector<1x1x16x16xf32>
    %106 = vector.shape_cast %105 : vector<1x1x16x16xf32> to vector<16x16xf32>
    %107 = vector.shape_cast %104 : vector<16x16xf32> to vector<1x1x16x16xf32>
    tpu.vector_store %arg4[%c0_75, %c7_76, %c0_77, %c0_78], %107 {strides = array<i32>} : memref<1x8x16x16xf32, #tpu.memory_space<vmem>>, vector<1x1x16x16xf32>,
    return
  }
  func.func @transform_0(%arg0: i32) -> (i32, i32, i32, i32) {
    %c0_i32 = arith.constant 0 : i32
    %c0_i32_0 = arith.constant 0 : i32
    %c0_i32_1 = arith.constant 0 : i32
    %c0_i32_2 = arith.constant 0 : i32
    return %arg0, %c0_i32, %c0_i32_0, %c0_i32_1 : i32, i32, i32, i32
  }
  func.func @transform_1(%arg0: i32) -> i32 {
    %c0_i32 = arith.constant 0 : i32
    %c0_i32_0 = arith.constant 0 : i32
    return %c0_i32 : i32
  }
  func.func @transform_2(%arg0: i32) -> i32 {
    %c0_i32 = arith.constant 0 : i32
    %c0_i32_0 = arith.constant 0 : i32
    return %c0_i32 : i32
  }
  func.func @transform_3(%arg0: i32) -> (i32, i32, i32, i32) {
    %c0_i32 = arith.constant 0 : i32
    %c0_i32_0 = arith.constant 0 : i32
    %c0_i32_1 = arith.constant 0 : i32
    %c0_i32_2 = arith.constant 0 : i32
    return %arg0, %c0_i32, %c0_i32_0, %c0_i32_1 : i32, i32, i32, i32
  }
}

</mosaic_0001>

<bundles_post_ra>
// kernel: tpu_custom_call.1
= control target key start
LH: loop header
LB: loop body
LE: loop exit
PB: predicated region body
PF: predicated region fallthrough
CT: control target
= control target key end

     0   :  { %8 = vsyncpa [#allocation4], 0  ;;  %s1109_s0 = inlined_call_operand.hbm [shape: f32[2,4,16,16], index: 0, kind: input, shape index: {}]   ;;  %s1110_s1 = inlined_call_operand.vmem [shape: f32[8], index: 1, kind: input, shape index: {}]   ;;  %s1111_s2 = inlined_call_operand.vmem [shape: f32[8], index: 2, kind: input, shape index: {}]   ;;  %s1112_s3 = inlined_call_operand.hbm [shape: f32[2,8,16,16], index: 3, kind: output, shape index: {}]  }
   0x1   :  { %10 = vsyncpa [#allocation4 + $0x1], 0 }
   0x2   :  { %11 = vsyncpa [#allocation6], 0 }
   0x3   :  { %12 = vsyncpa [#allocation9], 0 }
   0x4   :  { %13 = vsyncpa [#allocation5], 0 }
   0x5   :  { %15 = vsyncpa [#allocation5 + $0x1], 0  ;;  %s808_s12 = smov 0   ;;  %s810_s13 = smov 0  }
   0x6   :  { %s812_s14 = smov 0   ;;  %s814_s15 = smov 0  }
   0x7 LB: > { %s829_s16 = sadd.s32 4294967295, %s774_s15   ;;  %s517_s17 = sadd.s32 4294967294, %s774_s15   ;;  %s774_s15 = sphi %s814_s15, %s1138_s15   ;;  %s770_s14 = sphi %s812_s14, %s1137_s14   ;;  %s766_s13 = sphi %s810_s13, %s1136_s13   ;;  %s762_s12 = sphi %s808_s12, %s1135_s12  }
   0x8   : > { %s833_s18 = sadd.s32 1, %s774_s15   ;;  %s28_s19 = sadd.s32 1, %s770_s14 }
   0x9   : > { %s25_s20 = ssub.s32 %s774_s15, %s833_s18  ;;  %p35_p0 = scmp.ne.s32.totalorder %s770_s14, %s766_s13 }
   0xa   : > { %p26_p1 = scmp.eq.s32.totalorder %s25_s20, 0  ;;  %p36_p2 = scmp.eq.s32.totalorder %s774_s15, 0 }
   0xb   : > { %p41_p3 = scmp.ne.s32.totalorder %s766_s13, %s762_s12  ;;  %p1113_p4 = scmp.eq.s32.totalorder %s829_s16, 0 }
   0xc   : > { %s845_s21 = scalar_select %p26_p1, %s770_s14, %s28_s19  }
   0xd   : > { %p847_p5 = por %p36_p2, %p35_p0  ;;  %p853_p6 = por %p1113_p4, %p41_p3 }
   0xe   : > { %p107_p7 = scmp.eq.s32.totalorder %s829_s16, 1  ;;  %p113_p8 = scmp.eq.s32.totalorder %s517_s17, 1 }
   0xf   : > { %s1119_s23 = scalar_select %p853_p6, 1, 0 }
  0x10   : > { %p518_p9 = scmp.ge.s32.totalorder %s774_s15, 1  ;;  %p120_p10 = scmp.lt.s32.totalorder %s774_s15, 3 }
  0x11   : > { %p860_p11 = por %p107_p7, %p35_p0  ;;  %p864_p12 = por %p113_p8, %p41_p3 }
  0x12   : > { %p868_p13 = pnand %p518_p9, %p120_p10  ;;  %s133_s29 = sshll.u32 %s1110_s1, 4  ;;  %s134_s29 = int_to_ptr.vmem [resolvable:$true] %s133_s29 }
  0x13   : > { %s1120_s24 = scalar_select %p860_p11, 1, 0 }
  0x14   : > { %s1121_s25 = scalar_select %p864_p12, 1, 0 }
  0x15   : > { %s1122_s26 = scalar_select %p868_p13, 1, 0 }
  0x16   : > { %p577_p1 = pneg %p868_p13  ;;  %p594_p2 = scmp.lt.s32.totalorder %s774_s15, 2 }
  0x17   : > { %s144_s6 = sshll.u32 %s1111_s2, 4  ;;  %s640_s8 = scalar_lea.vmem %s134_s29, 16  ;;  %s145_s6 = int_to_ptr.vmem [resolvable:$true] %s144_s6 }
  0x18   : > { %p881_p7 = pnand %p577_p1, %p1113_p4  ;;  %p890_p3 = pnand %p594_p2, %p847_p5 }
  0x19   : > { %p641_p8 = scmp.ne.s32.totalorder %s134_s29, %s640_s8  ;;  %p648_p0 = scmp.lt.s32.totalorder %s134_s29, %s134_s29 }
  0x1a   : > { %s1124_s7 = scalar_select %p890_p3, 1, 0 }
  0x1b   : > { %p642_p9 = pneg %p881_p7  ;;  %p649_p4 = scmp.lt.s32.totalorder %s640_s8, %s640_s8 }
  0x1d   : > { %p643_p10 = pnand %p642_p9, %p641_p8  ;;  %p650_p12 = por %p649_p4, %p648_p0 }
  0x1f   : > { %p644_p1 = pneg %p643_p10 }
  0x21   : > { %p651_p11 = pnand %p650_p12, %p644_p1 }
  0x23   : > { %654 = shalt.err (!%p651_p11)
}
  0x24   : > { %s776_s9 = smov [#allocation7]   ;;  %s155_s10 = sand.u32 1, %s770_s14  }
  0x25   : > { %580 = dma.vmem_to_smem (!%p881_p7), %s134_s29, 16, %s776_s9, [#allocation6]  }
  0x26   : > { %s655_s11 = scalar_lea.vmem %s145_s6, 16  ;;  %p663_p8 = scmp.lt.s32.totalorder %s145_s6, %s145_s6 }
  0x27   : > { %p656_p5 = scmp.ne.s32.totalorder %s145_s6, %s655_s11  ;;  %p664_p10 = scmp.lt.s32.totalorder %s655_s11, %s655_s11 }
  0x29   : > { %p658_p2 = pnand %p656_p5, %p642_p9  ;;  %p665_p13 = por %p664_p10, %p663_p8 }
  0x2b   : > { %p659_p6 = pneg %p658_p2 }
  0x2d   : > { %p666_p3 = pnand %p665_p13, %p659_p6 }
  0x2f   : > { %669 = shalt.err (!%p666_p3)
}
  0x30   : > { %s777_s17 = smov [#allocation8]   ;;  %s522_s19 = sshll.u32 %s155_s10, 6 }
  0x31   : > { %583 = dma.vmem_to_smem (!%p881_p7), %s145_s6, 16, %s777_s17, [#allocation9]  }
  0x32   : > { %s563_s20 = sshll.u32 %s774_s15, 10  ;;  %s159_s29 = scalar_lea.vmem [#allocation3], %s522_s19 }
  0x33   : > { %s911_s28 = scalar_lea.hbm %s1109_s0, %s563_s20  ;;  %s166_s4 = sshll.u32 %s159_s29, 4  ;;  %s913_s4 = int_to_ptr.vmem [resolvable:$true] %s166_s4 }
  0x34   : > { %s915_s30 = scalar_lea.sflag [#allocation4], %s155_s10  ;;  %s670_s5 = scalar_lea.hbm %s911_s28, 1024 }
  0x35   : > { %p671_p4 = scmp.ne.s32.totalorder %s911_s28, %s670_s5  ;;  %p1125_p6 = scmp.ne.s32.totalorder %s1124_s7, 0 }
  0x36   : > { %s675_s9 = scalar_lea.hbm %s1109_s0, 2048  ;;  %p676_p0 = scmp.lt.u32.totalorder %s911_s28, %s1109_s0 }
  0x37   : > { %p672_p11 = pneg %p1125_p6  ;;  %p677_p7 = scmp.lt.u32.totalorder %s675_s9, %s670_s5 }
  0x38   : > { %p679_p9 = scmp.lt.u32.totalorder %s670_s5, %s911_s28 }
  0x39   : > { %p673_p12 = pnand %p672_p11, %p671_p4  ;;  %p678_p3 = por %p677_p7, %p676_p0 }
  0x3b   : > { %p674_p13 = pneg %p673_p12  ;;  %p680_p1 = por %p679_p9, %p678_p3 }
  0x3d   : > { %p681_p5 = pnand %p680_p1, %p674_p13 }
  0x3f   : > { %684 = shalt.err (!%p681_p5)
}
  0x40   : > { %s685_s10 = scalar_lea.vmem %s913_s4, 1024  ;;  %s778_s19 = smov [#allocation3]  }
  0x41   : > { %p686_p2 = scmp.ne.s32.totalorder %s913_s4, %s685_s10  ;;  %s690_s20 = sshll.u32 %s778_s19, 4  ;;  %s691_s20 = int_to_ptr.vmem [resolvable:$false] %s690_s20 }
  0x42   : > { %s692_s22 = scalar_lea.vmem %s691_s20, 2048  ;;  %p693_p4 = scmp.lt.s32.totalorder %s913_s4, %s691_s20 }
  0x43   : > { %p688_p8 = pnand %p686_p2, %p672_p11  ;;  %p694_p12 = scmp.lt.s32.totalorder %s692_s22, %s685_s10 }
  0x45   : > { %p689_p10 = pneg %p688_p8  ;;  %p695_p0 = por %p694_p12, %p693_p4 }
  0x47   : > { %p696_p7 = pnand %p695_p0, %p689_p10 }
  0x49   : > { %699 = shalt.err (!%p696_p7)
}
  0x4a   : > { %s779_s27 = smov 128   ;;  %s780_s29 = smov 8  }
  0x4b   : > { %587 = dma.hbm_to_vmem [thread:$0]  (!%p1125_p6), %s911_s28, 1024, %s913_s4, %s915_s30, %s779_s27, %s779_s27, %s780_s29  }
  0x4c   : > { %p1126_p11 = scmp.ne.s32.totalorder %s1122_s26, 0 }
  0x4d   : > { %s946_s5 = sand.u32 (!%p1126_p11), 1, %s766_s13   ;;  %p1127_p13 = scmp.ne.s32.totalorder (!%p1126_p11), %s1119_s23, 0 }
  0x4e   : > { %178 = sbr.rel (%p1126_p11) target bundleno = 391 (0x187), region = 32  ;;  %s526_s6 = sshll.u32 (!%p1126_p11), %s946_s5, 6 }
  0x4f   : > { %s181_s8 = scalar_lea.sflag (!%p1126_p11), [#allocation4], %s946_s5  ;;  %s184_s9 = scalar_lea.vmem (!%p1126_p11), [#allocation3], %s526_s6 }
  0x55   : > { %745 = dma.done.wait (%p1127_p13), %s181_s8, 1024  }
  0x56   : > { %747 = vsyncadd (%p1127_p13), %s181_s8, 4294966272  ;;  %p1128_p3 = scmp.eq.s32.totalorder %s829_s16, 0 }
  0x58   : > { %749 = dma.done.wait (%p1128_p3), [#allocation6], 16   ;;  %p1129_p6 = pmov %p1128_p3 }
  0x59   : > { %p1130_p9 = pmov %p1128_p3 }
  0x5a   : > { %751 = vsyncadd (%p1129_p6), [#allocation6], 4294967280 }
  0x5b   : > { %753 = dma.done.wait (%p1130_p9), [#allocation9], 16   ;;  %p1131_p1 = pmov %p1128_p3 }
  0x5d   : > { %755 = vsyncadd (%p1131_p1), [#allocation9], 4294967280 }
  0x5e   : > { %197 = sfence }
  0x5f   : > { %v221_v0 = vld [vmem:[%s184_s9] sm:$0xff]  ;;  %v223_v1 = vld [vmem:[%s184_s9 + $0x10] sm:$0xff]  ;;  %vm229_vm0 = vcmask 130048   ;;  %v222_v7 = vld [vmem:[%s184_s9 + $0x8] sm:$0xff]  ;;  %vm216_vm1 = vcmask 146432   ;;  %vm219_vm2 = vcmask 140288  }
  0x60   : > { %v225_v2 = vld [vmem:[%s184_s9 + $0x20] sm:$0xff]  ;;  %v227_v3 = vld [vmem:[%s184_s9 + $0x30] sm:$0xff]  ;;  %v230_v4 = vsel %vm229_vm0, %v221_v0, 0.0  ;;  %v231_v5 = vsel %vm229_vm0, %v223_v1, 0.0  ;;  %v224_v8 = vld [vmem:[%s184_s9 + $0x18] sm:$0xff]  ;;  %v237_v12 = vsel %vm229_vm0, %v222_v7, 0.0 }
  0x61   : > { %v233_v6 = vsel %vm229_vm0, %v225_v2, 0.0  ;;  %v232_v9 = vadd.f32 %v231_v5, %v230_v4  ;;  %v226_v10 = vld [vmem:[%s184_s9 + $0x28] sm:$0xff]  ;;  %v228_v11 = vld [vmem:[%s184_s9 + $0x38] sm:$0xff]  ;;  %v238_v13 = vsel %vm229_vm0, %v224_v8, 0.0  ;;  %v235_v14 = vsel %vm229_vm0, %v227_v3, 0.0  ;;  %s782_s23 = smov 1  }
  0x62   : > { %v239_v15 = vadd.f32 %v238_v13, %v237_v12  ;;  %v240_v16 = vsel %vm229_vm0, %v226_v10, 0.0  ;;  %v242_v19 = vsel %vm229_vm0, %v228_v11, 0.0  ;;  %v781_v20 = vmov 0.0   ;;  %s783_s26 = smov 126   ;;  %s784_s7 = smov 127  }
  0x63   : > { %v234_v17 = vadd.f32 %v233_v6, %v232_v9  ;;  %217 = vst.msk [vmem:[#allocation2] sm:$0xff] %vm216_vm1, %v781_v20  ;;  %218 = vst.msk [vmem:[#allocation2 + $0x8] sm:$0xff] %vm216_vm1, %v781_v20  ;;  %vm252_vm3 = vcmask 138248   ;;  %s974_s28 = sld [smem:[#allocation7]]  ;;  %s978_s30 = sld [smem:[#allocation7 + $0x1]] }
  0x64   : > { %v241_v18 = vadd.f32 %v240_v16, %v239_v15  ;;  %220 = vst.msk [vmem:[#allocation2 + $0x10] sm:$0x3] %vm219_vm2, %v781_v20  ;;  %s976_s4 = sld [smem:[#allocation8]]  ;;  %s980_s11 = sld [smem:[#allocation8 + $0x1]] }
  0x65   : > { %v236_v21 = vadd.f32 %v235_v14, %v234_v17  ;;  %s982_s17 = sld [smem:[#allocation7 + $0x2]]  ;;  %s986_s19 = sld [smem:[#allocation7 + $0x3]] }
  0x66   : > { %v243_v22 = vadd.f32 %v242_v19, %v241_v18  ;;  %s984_s10 = sld [smem:[#allocation8 + $0x2]]  ;;  %s988_s20 = sld [smem:[#allocation8 + $0x3]] }
  0x67   : > { %246 = vrot.lane.b32.xlu0 %v236_v21, %s782_s23  ;;  %s990_s22 = sld [smem:[#allocation7 + $0x4]]  ;;  %s994_s29 = sld [smem:[#allocation7 + $0x5]] }
  0x68   : > { %s992_s27 = sld [smem:[#allocation8 + $0x4]]  ;;  %s996_s6 = sld [smem:[#allocation8 + $0x5]] }
  0x69   : > { %s998_s8 = sld [smem:[#allocation7 + $0x6]]  ;;  %s1000_s9 = sld [smem:[#allocation7 + $0x7]]  ;;  %v322_v48 = vstv %s974_s28  ;;  %v332_v50 = vstv %s978_s30 }
  0x6a   : > { %v326_v49 = vstv %s976_s4  ;;  %v336_v51 = vstv %s980_s11  ;;  %s564_s4 = sshll.u32 %s829_s16, 11  ;;  %p1132_p2 = scmp.ne.s32.totalorder %s1120_s24, 0 }
  0x6b   : > { %248 = vrot.lane.b32.xlu0 %v243_v22, %s782_s23  ;;  %s1002_s23 = sld [smem:[#allocation8 + $0x6]]  ;;  %v343_v53 = vstv %s982_s17  ;;  %v354_v55 = vstv %s986_s19  ;;  %s1047_s17 = scalar_lea.hbm %s1112_s3, %s564_s4 }
  0x6c   : > { %v347_v54 = vstv %s984_s10  ;;  %v358_v57 = vstv %s988_s20  ;;  %s409_s10 = scalar_lea.sflag [#allocation5], %s946_s5  ;;  %s785_s20 = smov [#allocation10]  }
  0x6d   : > { %v365_v58 = vstv %s990_s22  ;;  %v376_v62 = vstv %s994_s29  ;;  %s704_s22 = sshll.u32 %s785_s20, 4  ;;  %s705_s22 = int_to_ptr.vmem [resolvable:$false] %s704_s22 }
  0x6e   : > { %v369_v59 = vstv %s992_s27  ;;  %v380_v2 = vstv %s996_s6  ;;  %s706_s27 = scalar_lea.vmem %s705_s22, 4096 }
  0x6f   : > { %v387_v63 = vstv %s998_s8  ;;  %v398_v0 = vstv %s1000_s9 }
  0x71   : > { %v391_v3 = vstv %s1002_s23 }
  0xd9   : > { %v247_v23 = vpop.permute.xlu0 %246 }
  0xda   : > { %253 = vst.msk [vmem:[#allocation2 + $0x1] sm:$0xff] %vm252_vm3, %v247_v23 }
  0xdd   : > { %v249_v24 = vpop.permute.xlu0 %248 }
  0xde   : > { %254 = vst.msk [vmem:[#allocation2 + $0x9] sm:$0xff] %vm252_vm3, %v249_v24 }
  0xe1   : > { %v255_v25 = vld [vmem:[#allocation2] sm:$0xff] }
  0xe2   : > { %269 = vrot.lane.b32.xlu0 %v255_v25, %s783_s26  ;;  %261 = vrot.lane.b32.xlu1 %v255_v25, %s784_s7  ;;  %v277_v26 = vld [vmem:[#allocation2 + $0x1] sm:$0xff] }
  0xe5   : > { %v256_v27 = vld [vmem:[#allocation2 + $0x8] sm:$0xff] }
  0xe6   : > { %283 = vrot.lane.b32.xlu0 %v277_v26, %s784_s7  ;;  %263 = vrot.lane.b32.xlu1 %v256_v27, %s784_s7  ;;  %v299_v28 = vld [vmem:[#allocation2 + $0x2] sm:$0xff]  ;;  %v970_v30 = vld [vmem:[#allocation2 + $0xa] sm:$0xff] }
  0xe7   : > { %v278_v29 = vld [vmem:[#allocation2 + $0x9] sm:$0xff] }
  0xea   : > { %291 = vrot.lane.b32.xlu0 %v277_v26, %s783_s26  ;;  %271 = vrot.lane.b32.xlu1 %v256_v27, %s783_s26 }
  0xee   : > { %305 = vrot.lane.b32.xlu0 %v299_v28, %s784_s7  ;;  %285 = vrot.lane.b32.xlu1 %v278_v29, %s784_s7 }
  0xf2   : > { %313 = vrot.lane.b32.xlu0 %v299_v28, %s783_s26  ;;  %293 = vrot.lane.b32.xlu1 %v278_v29, %s783_s26 }
  0xf6   : > { %307 = vrot.lane.b32.xlu1 %v970_v30, %s784_s7  ;;  %s529_s7 = sshll.u32 %s946_s5, 7 }
  0xf7   : > { %s1023_s28 = scalar_lea.vmem [#allocation10], %s529_s7 }
  0xf8   : > { %s422_s30 = sshll.u32 %s1023_s28, 4  ;;  %s1049_s30 = int_to_ptr.vmem [resolvable:$true] %s422_s30 }
  0xf9   : > { %s700_s19 = scalar_lea.vmem %s1049_s30, 2048  ;;  %p707_p4 = scmp.lt.s32.totalorder %s1049_s30, %s705_s22 }
  0xfa   : > { %315 = vrot.lane.b32.xlu1 %v970_v30, %s783_s26  ;;  %s1004_s26 = sld [smem:[#allocation8 + $0x7]]  ;;  %p701_p5 = scmp.ne.s32.totalorder %s1049_s30, %s700_s19 }
  0xfb   : > { %p708_p12 = scmp.lt.s32.totalorder %s706_s27, %s700_s19 }
  0xfc   : > { %p702_p8 = pnand %p701_p5, %p1132_p2 }
  0xfd   : > { %p709_p0 = por %p708_p12, %p707_p4 }
  0xfe   : > { %p703_p10 = pneg %p702_p8 }
 0x100   : > { %v402_v4 = vstv %s1004_s26  ;;  %p710_p7 = pnand %p709_p0, %p703_p10 }
 0x154   : > { %v270_v31 = vpop.permute.xlu0 %269  ;;  %v262_v32 = vpop.permute.xlu1 %261 }
 0x155   : > { %v267_v33 = vadd.f32 %v262_v32, %v255_v25 }
 0x157   : > { %v275_v34 = vadd.f32 %v270_v31, %v267_v33 }
 0x158   : > { %v284_v35 = vpop.permute.xlu0 %283  ;;  %v264_v36 = vpop.permute.xlu1 %263 }
 0x159   : > { %v279_v37 = vadd.f32 %v277_v26, %v275_v34  ;;  %v268_v39 = vadd.f32 %v264_v36, %v256_v27 }
 0x15b   : > { %v289_v38 = vadd.f32 %v284_v35, %v279_v37 }
 0x15c   : > { %v292_v40 = vpop.permute.xlu0 %291  ;;  %v272_v41 = vpop.permute.xlu1 %271 }
 0x15d   : > { %v297_v42 = vadd.f32 %v292_v40, %v289_v38  ;;  %v276_v43 = vadd.f32 %v272_v41, %v268_v39 }
 0x15f   : > { %v301_v44 = vadd.f32 %v299_v28, %v297_v42  ;;  %v280_v46 = vadd.f32 %v278_v29, %v276_v43 }
 0x160   : > { %v306_v45 = vpop.permute.xlu0 %305  ;;  %v286_v47 = vpop.permute.xlu1 %285 }
 0x161   : > { %v311_v52 = vadd.f32 %v306_v45, %v301_v44  ;;  %v290_v56 = vadd.f32 %v286_v47, %v280_v46 }
 0x164   : > { %v314_v60 = vpop.permute.xlu0 %313  ;;  %v294_v61 = vpop.permute.xlu1 %293 }
 0x165   : > { %v319_v1 = vadd.f32 %v314_v60, %v311_v52  ;;  %v298_v5 = vadd.f32 %v294_v61, %v290_v56 }
 0x167   : > { %v323_v6 = vmul.f32 %v322_v48, %v319_v1  ;;  %v333_v7 = vmul.f32 %v332_v50, %v319_v1  ;;  %v344_v8 = vmul.f32 %v343_v53, %v319_v1  ;;  %v355_v9 = vmul.f32 %v354_v55, %v319_v1 }
 0x168   : > { %v366_v10 = vmul.f32 %v365_v58, %v319_v1  ;;  %v377_v11 = vmul.f32 %v376_v62, %v319_v1  ;;  %v388_v12 = vmul.f32 %v387_v63, %v319_v1  ;;  %v399_v13 = vmul.f32 %v398_v0, %v319_v1  ;;  %v308_v14 = vpop.permute.xlu1 %307 }
 0x169   : > { %v327_v15 = vadd.f32 %v326_v49, %v323_v6  ;;  %v337_v16 = vadd.f32 %v336_v51, %v333_v7  ;;  %v348_v17 = vadd.f32 %v347_v54, %v344_v8  ;;  %v359_v18 = vadd.f32 %v358_v57, %v355_v9 }
 0x16a   : > { %v370_v19 = vadd.f32 %v369_v59, %v366_v10  ;;  %v381_v20 = vadd.f32 %v380_v2, %v377_v11  ;;  %v392_v21 = vadd.f32 %v391_v3, %v388_v12  ;;  %v403_v22 = vadd.f32 %v402_v4, %v399_v13 }
 0x16b   : > { %329 = vst.msk [vmem:[%s1023_s28] sm:$0xff] %vm229_vm0, %v327_v15  ;;  %532 = vst.msk [vmem:[%s1023_s28 + $0x10] sm:$0xff] %vm229_vm0, %v337_v16  ;;  %v302_v23 = vadd.f32 %v970_v30, %v298_v5 }
 0x16c   : > { %536 = vst.msk [vmem:[%s1023_s28 + $0x20] sm:$0xff] %vm229_vm0, %v348_v17  ;;  %540 = vst.msk [vmem:[%s1023_s28 + $0x30] sm:$0xff] %vm229_vm0, %v359_v18  ;;  %v316_v24 = vpop.permute.xlu1 %315 }
 0x16d   : > { %544 = vst.msk [vmem:[%s1023_s28 + $0x40] sm:$0xff] %vm229_vm0, %v370_v19  ;;  %548 = vst.msk [vmem:[%s1023_s28 + $0x50] sm:$0xff] %vm229_vm0, %v381_v20  ;;  %v312_v25 = vadd.f32 %v308_v14, %v302_v23 }
 0x16e   : > { %552 = vst.msk [vmem:[%s1023_s28 + $0x60] sm:$0xff] %vm229_vm0, %v392_v21  ;;  %556 = vst.msk [vmem:[%s1023_s28 + $0x70] sm:$0xff] %vm229_vm0, %v403_v22 }
 0x16f   : > { %v320_v26 = vadd.f32 %v316_v24, %v312_v25 }
 0x171   : > { %v324_v27 = vmul.f32 %v322_v48, %v320_v26  ;;  %v334_v28 = vmul.f32 %v332_v50, %v320_v26  ;;  %v345_v29 = vmul.f32 %v343_v53, %v320_v26  ;;  %v356_v31 = vmul.f32 %v354_v55, %v320_v26 }
 0x172   : > { %v367_v30 = vmul.f32 %v365_v58, %v320_v26  ;;  %v378_v32 = vmul.f32 %v376_v62, %v320_v26  ;;  %v389_v33 = vmul.f32 %v387_v63, %v320_v26  ;;  %v400_v34 = vmul.f32 %v398_v0, %v320_v26 }
 0x173   : > { %v328_v35 = vadd.f32 %v326_v49, %v324_v27  ;;  %v338_v36 = vadd.f32 %v336_v51, %v334_v28  ;;  %v349_v37 = vadd.f32 %v347_v54, %v345_v29  ;;  %v360_v38 = vadd.f32 %v358_v57, %v356_v31 }
 0x174   : > { %v371_v39 = vadd.f32 %v369_v59, %v367_v30  ;;  %v382_v40 = vadd.f32 %v380_v2, %v378_v32  ;;  %v393_v41 = vadd.f32 %v391_v3, %v389_v33  ;;  %v404_v42 = vadd.f32 %v402_v4, %v400_v34 }
 0x175   : > { %330 = vst.msk [vmem:[%s1023_s28 + $0x8] sm:$0xff] %vm229_vm0, %v328_v35  ;;  %533 = vst.msk [vmem:[%s1023_s28 + $0x18] sm:$0xff] %vm229_vm0, %v338_v36 }
 0x176   : > { %537 = vst.msk [vmem:[%s1023_s28 + $0x28] sm:$0xff] %vm229_vm0, %v349_v37  ;;  %541 = vst.msk [vmem:[%s1023_s28 + $0x38] sm:$0xff] %vm229_vm0, %v360_v38 }
 0x177   : > { %545 = vst.msk [vmem:[%s1023_s28 + $0x48] sm:$0xff] %vm229_vm0, %v371_v39  ;;  %549 = vst.msk [vmem:[%s1023_s28 + $0x58] sm:$0xff] %vm229_vm0, %v382_v40 }
 0x178   : > { %553 = vst.msk [vmem:[%s1023_s28 + $0x68] sm:$0xff] %vm229_vm0, %v393_v41  ;;  %557 = vst.msk [vmem:[%s1023_s28 + $0x78] sm:$0xff] %vm229_vm0, %v404_v42 }
 0x179   : > { %713 = shalt.err (!%p710_p7)
}
 0x17a   : > { %s714_s29 = scalar_lea.hbm %s1047_s17, 2048  ;;  %s718_s9 = scalar_lea.hbm %s1112_s3, 4096 }
 0x17b   : > { %p715_p11 = scmp.ne.s32.totalorder %s1047_s17, %s714_s29  ;;  %p719_p6 = scmp.lt.u32.totalorder %s1047_s17, %s1112_s3 }
 0x17c   : > { %p720_p9 = scmp.lt.u32.totalorder %s718_s9, %s714_s29  ;;  %p722_p5 = scmp.lt.u32.totalorder %s714_s29, %s1047_s17 }
 0x17d   : > { %p716_p13 = pnand %p715_p11, %p1132_p2 }
 0x17e   : > { %p721_p1 = por %p720_p9, %p719_p6 }
 0x17f   : > { %p717_p3 = pneg %p716_p13 }
 0x180   : > { %p723_p8 = por %p722_p5, %p721_p1 }
 0x182   : > { %p724_p10 = pnand %p723_p8, %p717_p3 }
 0x184   : > { %727 = shalt.err (!%p724_p10)
}
 0x185   : > { %s786_s7 = smov 128   ;;  %s787_s28 = smov 8  }
 0x186   : > { %575 = dma.vmem_to_hbm [thread:$0]  (%p1132_p2), %s1049_s30, 2048, %s1047_s17, %s409_s10, %s786_s7, %s786_s7, %s787_s28  }
 0x187 PF: > { %s437_s4 = sand.u32 1, %s762_s12   ;;  %p1133_p4 = scmp.ne.s32.totalorder %s1121_s25, 0 }
 0x188   : > { %p1134_p12 = scmp.ge.s32.totalorder %s774_s15, 2  ;;  %s438_s16 = scalar_lea.sflag [#allocation5], %s437_s4 }
 0x18a   : > { %p589_p0 = pnand %p1134_p12, %p1133_p4 }
 0x18c   : > { %757 = dma.done.wait (!%p589_p0), %s438_s16, 2048  }
 0x18d   : > { %759 = vsyncadd (!%p589_p0), %s438_s16, 4294965248  ;;  %p18_p7 = scmp.ge.s32.totalorder %s833_s18, 4   ;;  %s1135_s12 = smov %s766_s13 }
 0x18e   : > { %s1136_s13 = smov %s770_s14  ;;  %s1137_s14 = smov %s845_s21 }
 0x18f   : > { %s1138_s15 = smov %s833_s18  ;;  %20 = sbr.rel (!%p18_p7) target bundleno = 7 (0x7), region = 93 }
 0x196   :  { %443 = vsyncpa [#allocation4], 1 }
 0x197   :  { %445 = vsyncpa [#allocation4 + $0x1], 1 }
 0x198   :  { %446 = vsyncpa [#allocation5], 1 }
 0x199   :  { %448 = vsyncpa [#allocation5 + $0x1], 1 }
 0x19a   :  { %449 = vsyncpa [#allocation6], 1 }
 0x19b   :  { %451 = vsyncpa [#allocation6 + $0x1], 1 }
 0x19c   :  { %452 = vsyncpa [#allocation9], 1 }

</bundles_post_ra>
